<compile_context>
chip_gen: v7x
topology: tpu7x:2x2x1
jax: 0.10.0
libtpu: 0.0.40
codegen_flags: <defaults>
</compile_context>

<pallas_src>
import functools

import jax
import jax.numpy as jnp
from jax.experimental import pallas as pl
from jax.experimental.pallas import tpu as pltpu

BN_EPS = 1e-5


def _round_up(x, m):
    return (x + m - 1) // m * m


# ---------------------------------------------------------------------------
# In-kernel helpers
# ---------------------------------------------------------------------------
def _bn_train_fast(x, inv_n):
    """BatchNorm1d(affine=False), training mode, one-pass batch statistics.

    Uses sums scaled by a compile-time 1/B instead of jnp.mean to shorten the
    serial XLU -> EUP -> VPU chain.
    """
    s = jnp.sum(x, axis=0, keepdims=True)
    ss = jnp.sum(x * x, axis=0, keepdims=True)
    mu = s * inv_n
    var = jnp.maximum(ss * inv_n - mu * mu, 0.0)
    return (x - mu) * jax.lax.rsqrt(var + BN_EPS)


def _dcn_kernel(col_voff, vpad, emb_off, bpad, cross_off, n_cross,
                deep_dims, deep_offs, head_off, F,
                x_ref, slab_ref, out_ref):
    """Single grid point; everything resident in VMEM.

    x_ref    : (B, ncols)   f32  raw categorical ids (as floats, like torch)
    slab_ref : (rows, 128)  f32  packed params (emb / cross / deep / head)
    out_ref  : (B, 1)       f32  sigmoid output
    """
    xi = x_ref[...].astype(jnp.int32)                  # (B, ncols), trunc like .long()
    B, ncols = xi.shape
    inv_b = 1.0 / float(B)
    d_last = deep_dims[-1][1]

    # ---------------- fused embedding (averaged one-hot @ block-diag table) --
    iota_v = jax.lax.broadcasted_iota(jnp.int32, (B, vpad), 1)   # hoisted
    counts = None
    for j in range(ncols):
        onehot = (xi[:, j:j + 1] + col_voff[j] == iota_v).astype(jnp.float32)
        counts = onehot if counts is None else counts + onehot
    emb_tbl = slab_ref[emb_off:emb_off + vpad, 0:F]              # pre-scaled by 1/width
    x0 = jnp.dot(counts, emb_tbl, preferred_element_type=jnp.float32)   # (B, F)

    # ---------------- cross tower (unrolled; stays in one basic block) -------
    cross = x0
    for i in range(n_cross):
        w_row = cross_off + (2 * i) * bpad
        b_row = cross_off + (2 * i + 1) * bpad
        w = slab_ref[w_row:w_row + B, 0:F]                       # (B, F)
        b = slab_ref[b_row:b_row + B, 0:F]                       # (B, F)
        # t = cross^T @ x0  -> (F, F);  m = W @ t -> (B, F)
        t = jax.lax.dot_general(cross, x0, (((0,), (0,)), ((), ())),
                                preferred_element_type=jnp.float32)
        m = jnp.dot(w, t, preferred_element_type=jnp.float32)
        cross = _bn_train_fast(m + cross + b, inv_b)

    # ---------------- deep tower (independent of cross until the head) -------
    deep = x0
    for (d_in, d_out), off in zip(deep_dims, deep_offs):
        w = slab_ref[off:off + d_in, 0:d_out]                    # (d_in, d_out)
        b = slab_ref[off + d_in:off + d_in + 1, 0:d_out]         # (1, d_out)
        deep = jnp.dot(deep, w, preferred_element_type=jnp.float32) + b
        deep = jnp.maximum(_bn_train_fast(deep, inv_b), 0.0)

    # ---------------- output head (split matmul, no concat) ------------------
    w_c = slab_ref[head_off:head_off + F, 0:1]                   # (F, 1)
    w_d = slab_ref[head_off + F:head_off + F + d_last, 0:1]      # (d_last, 1)
    b_o = slab_ref[head_off + F + d_last:head_off + F + d_last + 1, 0:1]  # (1, 1)
    logit = (jnp.dot(cross, w_c, preferred_element_type=jnp.float32)
             + jnp.dot(deep, w_d, preferred_element_type=jnp.float32)
             + b_o)
    out_ref[...] = jax.nn.sigmoid(logit)


# ---------------------------------------------------------------------------
# Parameter packing (host-side, done once): one lane-dense (rows, 128) slab
# ---------------------------------------------------------------------------
def column_vocab_offsets(feature_num):
    """Per-X-column offset into the concatenated (block-diag) vocab axis."""
    offs, voff = [], 0
    for n in feature_num:
        offs.extend([voff] * n)
        voff += n
    return tuple(offs)


def pack_slab(emb_tables, feature_num, cross_w, cross_b, deep_params,
              w_out, b_out, F, B):
    C = 128
    assert F <= C, "all_feature_num must be <= 128 for this packing"
    blocks, off = [], 0

    # 1) block-diagonal embedding table, pre-scaled by 1/field_width (== mean)
    V = sum(int(t.shape[0]) for t in emb_tables)
    vpad = _round_up(V, 8)
    emb_blk = jnp.zeros((vpad, C), jnp.float32)
    voff = doff = 0
    for tbl, width in zip(emb_tables, feature_num):
        v, d = int(tbl.shape[0]), int(tbl.shape[1])
        emb_blk = emb_blk.at[voff:voff + v, doff:doff + d].set(
            tbl.astype(jnp.float32) / float(width))
        voff += v
        doff += d
    emb_off = off
    blocks.append(emb_blk)
    off += vpad

    # 2) cross params [w0, b0, w1, b1, ...], each (B, F) in a (bpad, 128) block
    bpad = _round_up(B, 8)
    cross_off = off
    n_cross = int(cross_w.shape[0])
    for i in range(n_cross):
        for mat in (cross_w[i, :B, :], cross_b[i, :B, :]):
            blk = jnp.zeros((bpad, C), jnp.float32)
            blk = blk.at[:B, :F].set(mat.astype(jnp.float32))
            blocks.append(blk)
            off += bpad

    # 3) deep layers: weight rows + one bias row per layer
    deep_offs, deep_dims = [], []
    for w, b in deep_params:
        d_in, d_out = int(w.shape[0]), int(w.shape[1])
        assert d_out <= C, "deep layer width must be <= 128 for this packing"
        rows = _round_up(d_in + 1, 8)
        blk = jnp.zeros((rows, C), jnp.float32)
        blk = blk.at[:d_in, :d_out].set(w.astype(jnp.float32))
        blk = blk.at[d_in, :d_out].set(b.reshape(-1).astype(jnp.float32))
        blocks.append(blk)
        deep_offs.append(off)
        deep_dims.append((d_in, d_out))
        off += rows

    # 4) output head: w_out rows + bias row, in lane 0
    head_off = off
    d_last = deep_dims[-1][1]
    n_head = F + d_last
    rows = _round_up(n_head + 1, 8)
    blk = jnp.zeros((rows, C), jnp.float32)
    blk = blk.at[:n_head, 0].set(w_out[:, 0].astype(jnp.float32))
    blk = blk.at[n_head, 0].set(jnp.reshape(b_out, ()).astype(jnp.float32))
    blocks.append(blk)
    off += rows

    slab = jnp.concatenate(blocks, axis=0)
    meta = dict(vpad=vpad, emb_off=emb_off, bpad=bpad, cross_off=cross_off,
                n_cross=n_cross, deep_dims=tuple(deep_dims),
                deep_offs=tuple(deep_offs), head_off=head_off)
    return slab, meta


# ---------------------------------------------------------------------------
# Build the jitted forward: jit body is exactly ONE op (the pallas_call)
# ---------------------------------------------------------------------------
def build_dcn_forward(meta, col_voff, F, B, ncols, slab_rows):
    deep_dims = meta["deep_dims"]
    d_last = deep_dims[-1][1]
    n_cross = meta["n_cross"]

    kernel = functools.partial(
        _dcn_kernel, tuple(col_voff), meta["vpad"], meta["emb_off"],
        meta["bpad"], meta["cross_off"], n_cross,
        deep_dims, meta["deep_offs"], meta["head_off"], F)

    vmem_spec = pl.BlockSpec(memory_space=pltpu.MemorySpace.VMEM)

    # Advisory cost estimate for XLA's scheduler.
    flops = 2 * B * meta["vpad"] * F                       # embedding matmul
    flops += n_cross * 4 * B * F * F                       # cross tower
    for d_in, d_out in deep_dims:
        flops += 2 * B * d_in * d_out                      # deep tower
    flops += 2 * B * (F + d_last)                          # head
    transcendentals = n_cross * F + sum(d for _, d in deep_dims) + B
    bytes_accessed = 4 * (B * ncols + slab_rows * 128 + B)
    cost = pl.CostEstimate(flops=flops, transcendentals=transcendentals,
                           bytes_accessed=bytes_accessed)

    dcn_call = pl.pallas_call(
        kernel,
        out_shape=jax.ShapeDtypeStruct((B, 1), jnp.float32),
        in_specs=[vmem_spec, vmem_spec],
        out_specs=vmem_spec,
        compiler_params=pltpu.CompilerParams(vmem_limit_bytes=16 * 1024 * 1024),
        cost_estimate=cost,
    )

    @jax.jit
    def forward(X, slab):
        return dcn_call(X, slab)

    return forward


# ---------------------------------------------------------------------------
# Pure-JAX reference (torch-faithful math) for validation
# ---------------------------------------------------------------------------
def embed_mean(X, emb_tables, feature_num):
    first = 0
    parts = []
    for i, n in enumerate(feature_num):
        idx = X[:, first:first + n].astype(jnp.int32)
        parts.append(jnp.mean(emb_tables[i][idx], axis=1))
        first += n
    return jnp.concatenate(parts, axis=1)


def _bn_ref(x):
    mu = jnp.mean(x, axis=0, keepdims=True)
    var = jnp.mean((x - mu) ** 2, axis=0, keepdims=True)
    return (x - mu) * jax.lax.rsqrt(var + BN_EPS)


def dcn_reference(x0, cross_w, cross_b, deep_params, w_out, b_out):
    cross = x0
    for i in range(cross_w.shape[0]):
        w, b = cross_w[i], cross_b[i]
        t = jnp.matmul(jnp.matmul(x0.T, cross), w.T) + cross.T + b.T
        cross = _bn_ref(t.T)
    deep = x0
    for w, b in deep_params:
        deep = jnp.maximum(_bn_ref(jnp.matmul(deep, w) + b), 0.0)
    cat = jnp.concatenate([cross, deep], axis=1)
    return jax.nn.sigmoid(jnp.matmul(cat, w_out) + b_out)


if __name__ == "__main__":
    # Small configuration consistent with the module's structure.
    feature_num = [4, 3]                      # per-field vocab size == field width
    emb_feature_num_list = [8, 8]             # per-field embedding dims
    all_feature_num = sum(emb_feature_num_list)          # 16
    cross_iter_epoch = 2
    deep_layer_num_list = [all_feature_num, 32, 16]
    deep_iter_epoch = len(deep_layer_num_list) - 1       # 2
    PARAM_BATCH = 128                         # module's self.batch_size
    B = 8                                     # runtime batch (<= PARAM_BATCH)
    ncols = sum(feature_num)                  # 7 input columns

    key = jax.random.PRNGKey(0)
    keys = jax.random.split(key, 32)
    kit = iter(keys)

    # Deterministic parameter init (synthetic; not a checkpoint load).
    emb_tables = [jax.random.normal(next(kit), (v, d), jnp.float32) * 0.1
                  for v, d in zip(feature_num, emb_feature_num_list)]
    cross_w = jax.random.normal(next(kit),
                                (cross_iter_epoch, PARAM_BATCH, all_feature_num),
                                jnp.float32)
    cross_b = jax.random.normal(next(kit),
                                (cross_iter_epoch, PARAM_BATCH, all_feature_num),
                                jnp.float32)
    deep_params = []
    for i in range(deep_iter_epoch):
        fan_in = deep_layer_num_list[i]
        lim = 1.0 / float(fan_in) ** 0.5
        w = jax.random.uniform(next(kit),
                               (deep_layer_num_list[i], deep_layer_num_list[i + 1]),
                               jnp.float32, -lim, lim)
        b = jax.random.uniform(next(kit), (1, deep_layer_num_list[i + 1]),
                               jnp.float32, -lim, lim)
        deep_params.append((w, b))
    out_in = all_feature_num + deep_layer_num_list[-1]
    lim = 1.0 / float(out_in) ** 0.5
    w_out = jax.random.uniform(next(kit), (out_in, 1), jnp.float32, -lim, lim)
    b_out = jax.random.uniform(next(kit), (1, 1), jnp.float32, -lim, lim)

    # Input: integer category ids per column, stored as float (like x_train.float()).
    cols = []
    for i, v in enumerate(feature_num):
        cols.append(jax.random.randint(next(kit), (B, v), 0, v))
    X = jnp.concatenate(cols, axis=1).astype(jnp.float32)    # (B, 7)

    # ---- pack everything into ONE static slab (done once) ----
    slab, meta = pack_slab(emb_tables, feature_num, cross_w, cross_b,
                           deep_params, w_out, b_out, all_feature_num, B)
    col_voff = column_vocab_offsets(feature_num)

    forward = build_dcn_forward(meta, col_voff, all_feature_num, B, ncols,
                                int(slab.shape[0]))

    y = forward(X, slab)
    y = jax.block_until_ready(y)

    # Reference (torch-faithful: gather embedding + two-pass BN).
    x0 = embed_mean(X, emb_tables, feature_num)
    y_ref = dcn_reference(x0, cross_w[:, :B, :], cross_b[:, :B, :],
                          deep_params, w_out, b_out)

    assert y.shape == (B, 1), y.shape
    assert bool(jnp.all(jnp.isfinite(y)))
    assert bool(jnp.allclose(y, y_ref, rtol=1e-3, atol=1e-4)), (y, y_ref)
    print("KERNEL_OK")
</pallas_src>

<mosaic_0001>
module attributes {stable_mosaic.version = 11 : i64} {
  func.func @_dcn_kernel(%arg0: memref<8x7xf32, #tpu.memory_space<vmem>>, %arg1: memref<144x128xf32, #tpu.memory_space<vmem>>, %arg2: memref<8x1xf32, #tpu.memory_space<vmem>>) attributes {dimension_semantics = [], scalar_prefetch = 0 : i64, scratch_operands = 0 : i64, tpu.core_type = #tpu.core_type<tc>} {
    %c0 = arith.constant 0 : index
    %c0_0 = arith.constant 0 : index
    %0 = vector.load %arg0[%c0, %c0_0] : memref<8x7xf32, #tpu.memory_space<vmem>>, vector<8x7xf32>
    %1 = arith.fptosi %0 : vector<8x7xf32> to vector<8x7xi32>
    %2 = tpu.iota {dimensions = array<i32: 1>} : vector<8x8xi32>
    %3 = vector.extract_strided_slice %1 {offsets = [0, 0], sizes = [8, 1], strides = [1, 1]} : vector<8x7xi32> to vector<8x1xi32>
    %c0_i32 = arith.constant 0 : i32
    %4 = vector.broadcast %c0_i32 : i32 to vector<8x1xi32>
    %5 = arith.addi %3, %4 : vector<8x1xi32>
    %6 = vector.broadcast %5 : vector<8x1xi32> to vector<8x8xi32>
    %7 = arith.cmpi eq, %6, %2 : vector<8x8xi32>
    %8 = arith.extui %7 : vector<8x8xi1> to vector<8x8xi32>
    %9 = arith.sitofp %8 : vector<8x8xi32> to vector<8x8xf32>
    %10 = vector.extract_strided_slice %1 {offsets = [0, 1], sizes = [8, 1], strides = [1, 1]} : vector<8x7xi32> to vector<8x1xi32>
    %c0_i32_1 = arith.constant 0 : i32
    %11 = vector.broadcast %c0_i32_1 : i32 to vector<8x1xi32>
    %12 = arith.addi %10, %11 : vector<8x1xi32>
    %13 = vector.broadcast %12 : vector<8x1xi32> to vector<8x8xi32>
    %14 = arith.cmpi eq, %13, %2 : vector<8x8xi32>
    %15 = arith.extui %14 : vector<8x8xi1> to vector<8x8xi32>
    %16 = arith.sitofp %15 : vector<8x8xi32> to vector<8x8xf32>
    %17 = arith.addf %9, %16 : vector<8x8xf32>
    %18 = vector.extract_strided_slice %1 {offsets = [0, 2], sizes = [8, 1], strides = [1, 1]} : vector<8x7xi32> to vector<8x1xi32>
    %c0_i32_2 = arith.constant 0 : i32
    %19 = vector.broadcast %c0_i32_2 : i32 to vector<8x1xi32>
    %20 = arith.addi %18, %19 : vector<8x1xi32>
    %21 = vector.broadcast %20 : vector<8x1xi32> to vector<8x8xi32>
    %22 = arith.cmpi eq, %21, %2 : vector<8x8xi32>
    %23 = arith.extui %22 : vector<8x8xi1> to vector<8x8xi32>
    %24 = arith.sitofp %23 : vector<8x8xi32> to vector<8x8xf32>
    %25 = arith.addf %17, %24 : vector<8x8xf32>
    %26 = vector.extract_strided_slice %1 {offsets = [0, 3], sizes = [8, 1], strides = [1, 1]} : vector<8x7xi32> to vector<8x1xi32>
    %c0_i32_3 = arith.constant 0 : i32
    %27 = vector.broadcast %c0_i32_3 : i32 to vector<8x1xi32>
    %28 = arith.addi %26, %27 : vector<8x1xi32>
    %29 = vector.broadcast %28 : vector<8x1xi32> to vector<8x8xi32>
    %30 = arith.cmpi eq, %29, %2 : vector<8x8xi32>
    %31 = arith.extui %30 : vector<8x8xi1> to vector<8x8xi32>
    %32 = arith.sitofp %31 : vector<8x8xi32> to vector<8x8xf32>
    %33 = arith.addf %25, %32 : vector<8x8xf32>
    %34 = vector.extract_strided_slice %1 {offsets = [0, 4], sizes = [8, 1], strides = [1, 1]} : vector<8x7xi32> to vector<8x1xi32>
    %c4_i32 = arith.constant 4 : i32
    %35 = vector.broadcast %c4_i32 : i32 to vector<8x1xi32>
    %36 = arith.addi %34, %35 : vector<8x1xi32>
    %37 = vector.broadcast %36 : vector<8x1xi32> to vector<8x8xi32>
    %38 = arith.cmpi eq, %37, %2 : vector<8x8xi32>
    %39 = arith.extui %38 : vector<8x8xi1> to vector<8x8xi32>
    %40 = arith.sitofp %39 : vector<8x8xi32> to vector<8x8xf32>
    %41 = arith.addf %33, %40 : vector<8x8xf32>
    %42 = vector.extract_strided_slice %1 {offsets = [0, 5], sizes = [8, 1], strides = [1, 1]} : vector<8x7xi32> to vector<8x1xi32>
    %c4_i32_4 = arith.constant 4 : i32
    %43 = vector.broadcast %c4_i32_4 : i32 to vector<8x1xi32>
    %44 = arith.addi %42, %43 : vector<8x1xi32>
    %45 = vector.broadcast %44 : vector<8x1xi32> to vector<8x8xi32>
    %46 = arith.cmpi eq, %45, %2 : vector<8x8xi32>
    %47 = arith.extui %46 : vector<8x8xi1> to vector<8x8xi32>
    %48 = arith.sitofp %47 : vector<8x8xi32> to vector<8x8xf32>
    %49 = arith.addf %41, %48 : vector<8x8xf32>
    %50 = vector.extract_strided_slice %1 {offsets = [0, 6], sizes = [8, 1], strides = [1, 1]} : vector<8x7xi32> to vector<8x1xi32>
    %c4_i32_5 = arith.constant 4 : i32
    %51 = vector.broadcast %c4_i32_5 : i32 to vector<8x1xi32>
    %52 = arith.addi %50, %51 : vector<8x1xi32>
    %53 = vector.broadcast %52 : vector<8x1xi32> to vector<8x8xi32>
    %54 = arith.cmpi eq, %53, %2 : vector<8x8xi32>
    %55 = arith.extui %54 : vector<8x8xi1> to vector<8x8xi32>
    %56 = arith.sitofp %55 : vector<8x8xi32> to vector<8x8xf32>
    %57 = arith.addf %49, %56 : vector<8x8xf32>
    %c0_6 = arith.constant 0 : index
    %c0_7 = arith.constant 0 : index
    %58 = vector.load %arg1[%c0_6, %c0_7] : memref<144x128xf32, #tpu.memory_space<vmem>>, vector<8x16xf32>
    %cst = arith.constant dense<0.000000e+00> : vector<8x16xf32>
    %59 = tpu.matmul %57, %58, %cst {dimension_numbers = #tpu.dot_dimension_numbers<[1], [0], [0], [1], [0, 0, 1, 1], [], []>} : vector<8x8xf32>, vector<8x16xf32>, vector<8x16xf32> -> vector<8x16xf32>
    %c8 = arith.constant 8 : index
    %c0_8 = arith.constant 0 : index
    %60 = vector.load %arg1[%c8, %c0_8] : memref<144x128xf32, #tpu.memory_space<vmem>>, vector<8x16xf32>
    %c16 = arith.constant 16 : index
    %c0_9 = arith.constant 0 : index
    %61 = vector.load %arg1[%c16, %c0_9] : memref<144x128xf32, #tpu.memory_space<vmem>>, vector<8x16xf32>
    %cst_10 = arith.constant dense<0.000000e+00> : vector<16x16xf32>
    %62 = tpu.matmul %59, %59, %cst_10 {dimension_numbers = #tpu.dot_dimension_numbers<[0], [0], [1], [1], [0, 1, 1, 1], [], []>} : vector<8x16xf32>, vector<8x16xf32>, vector<16x16xf32> -> vector<16x16xf32>
    %cst_11 = arith.constant dense<0.000000e+00> : vector<8x16xf32>
    %63 = tpu.matmul %60, %62, %cst_11 {dimension_numbers = #tpu.dot_dimension_numbers<[1], [0], [0], [1], [0, 0, 1, 1], [], []>} : vector<8x16xf32>, vector<16x16xf32>, vector<8x16xf32> -> vector<8x16xf32>
    %64 = arith.addf %63, %59 : vector<8x16xf32>
    %65 = arith.addf %64, %61 : vector<8x16xf32>
    %cst_12 = arith.constant dense<0.000000e+00> : vector<16xf32>
    %66 = vector.multi_reduction <add>, %65, %cst_12 [0] : vector<8x16xf32> to vector<16xf32>
    %67 = vector.shape_cast %66 : vector<16xf32> to vector<1x16xf32>
    %68 = arith.mulf %65, %65 : vector<8x16xf32>
    %cst_13 = arith.constant dense<0.000000e+00> : vector<16xf32>
    %69 = vector.multi_reduction <add>, %68, %cst_13 [0] : vector<8x16xf32> to vector<16xf32>
    %70 = vector.shape_cast %69 : vector<16xf32> to vector<1x16xf32>
    %cst_14 = arith.constant 1.250000e-01 : f32
    %71 = vector.broadcast %cst_14 : f32 to vector<1x16xf32>
    %72 = arith.mulf %67, %71 : vector<1x16xf32>
    %cst_15 = arith.constant 1.250000e-01 : f32
    %73 = vector.broadcast %cst_15 : f32 to vector<1x16xf32>
    %74 = arith.mulf %70, %73 : vector<1x16xf32>
    %75 = arith.mulf %72, %72 : vector<1x16xf32>
    %76 = arith.subf %74, %75 : vector<1x16xf32>
    %cst_16 = arith.constant 0.000000e+00 : f32
    %77 = vector.broadcast %cst_16 : f32 to vector<1x16xf32>
    %78 = arith.maximumf %76, %77 : vector<1x16xf32>
    %79 = vector.broadcast %72 : vector<1x16xf32> to vector<8x16xf32>
    %80 = arith.subf %65, %79 : vector<8x16xf32>
    %cst_17 = arith.constant 9.99999974E-6 : f32
    %81 = vector.broadcast %cst_17 : f32 to vector<1x16xf32>
    %82 = arith.addf %78, %81 : vector<1x16xf32>
    %83 = math.rsqrt %82 : vector<1x16xf32>
    %84 = vector.broadcast %83 : vector<1x16xf32> to vector<8x16xf32>
    %85 = arith.mulf %80, %84 : vector<8x16xf32>
    %c24 = arith.constant 24 : index
    %c0_18 = arith.constant 0 : index
    %86 = vector.load %arg1[%c24, %c0_18] : memref<144x128xf32, #tpu.memory_space<vmem>>, vector<8x16xf32>
    %c32 = arith.constant 32 : index
    %c0_19 = arith.constant 0 : index
    %87 = vector.load %arg1[%c32, %c0_19] : memref<144x128xf32, #tpu.memory_space<vmem>>, vector<8x16xf32>
    %cst_20 = arith.constant dense<0.000000e+00> : vector<16x16xf32>
    %88 = tpu.matmul %85, %59, %cst_20 {dimension_numbers = #tpu.dot_dimension_numbers<[0], [0], [1], [1], [0, 1, 1, 1], [], []>} : vector<8x16xf32>, vector<8x16xf32>, vector<16x16xf32> -> vector<16x16xf32>
    %cst_21 = arith.constant dense<0.000000e+00> : vector<8x16xf32>
    %89 = tpu.matmul %86, %88, %cst_21 {dimension_numbers = #tpu.dot_dimension_numbers<[1], [0], [0], [1], [0, 0, 1, 1], [], []>} : vector<8x16xf32>, vector<16x16xf32>, vector<8x16xf32> -> vector<8x16xf32>
    %90 = arith.addf %89, %85 : vector<8x16xf32>
    %91 = arith.addf %90, %87 : vector<8x16xf32>
    %cst_22 = arith.constant dense<0.000000e+00> : vector<16xf32>
    %92 = vector.multi_reduction <add>, %91, %cst_22 [0] : vector<8x16xf32> to vector<16xf32>
    %93 = vector.shape_cast %92 : vector<16xf32> to vector<1x16xf32>
    %94 = arith.mulf %91, %91 : vector<8x16xf32>
    %cst_23 = arith.constant dense<0.000000e+00> : vector<16xf32>
    %95 = vector.multi_reduction <add>, %94, %cst_23 [0] : vector<8x16xf32> to vector<16xf32>
    %96 = vector.shape_cast %95 : vector<16xf32> to vector<1x16xf32>
    %cst_24 = arith.constant 1.250000e-01 : f32
    %97 = vector.broadcast %cst_24 : f32 to vector<1x16xf32>
    %98 = arith.mulf %93, %97 : vector<1x16xf32>
    %cst_25 = arith.constant 1.250000e-01 : f32
    %99 = vector.broadcast %cst_25 : f32 to vector<1x16xf32>
    %100 = arith.mulf %96, %99 : vector<1x16xf32>
    %101 = arith.mulf %98, %98 : vector<1x16xf32>
    %102 = arith.subf %100, %101 : vector<1x16xf32>
    %cst_26 = arith.constant 0.000000e+00 : f32
    %103 = vector.broadcast %cst_26 : f32 to vector<1x16xf32>
    %104 = arith.maximumf %102, %103 : vector<1x16xf32>
    %105 = vector.broadcast %98 : vector<1x16xf32> to vector<8x16xf32>
    %106 = arith.subf %91, %105 : vector<8x16xf32>
    %cst_27 = arith.constant 9.99999974E-6 : f32
    %107 = vector.broadcast %cst_27 : f32 to vector<1x16xf32>
    %108 = arith.addf %104, %107 : vector<1x16xf32>
    %109 = math.rsqrt %108 : vector<1x16xf32>
    %110 = vector.broadcast %109 : vector<1x16xf32> to vector<8x16xf32>
    %111 = arith.mulf %106, %110 : vector<8x16xf32>
    %c40 = arith.constant 40 : index
    %c0_28 = arith.constant 0 : index
    %112 = vector.load %arg1[%c40, %c0_28] : memref<144x128xf32, #tpu.memory_space<vmem>>, vector<16x32xf32>
    %c56 = arith.constant 56 : index
    %c0_29 = arith.constant 0 : index
    %113 = vector.load %arg1[%c56, %c0_29] : memref<144x128xf32, #tpu.memory_space<vmem>>, vector<1x32xf32>
    %cst_30 = arith.constant dense<0.000000e+00> : vector<8x32xf32>
    %114 = tpu.matmul %59, %112, %cst_30 {dimension_numbers = #tpu.dot_dimension_numbers<[1], [0], [0], [1], [0, 0, 1, 1], [], []>} : vector<8x16xf32>, vector<16x32xf32>, vector<8x32xf32> -> vector<8x32xf32>
    %115 = vector.broadcast %113 : vector<1x32xf32> to vector<8x32xf32>
    %116 = arith.addf %114, %115 : vector<8x32xf32>
    %cst_31 = arith.constant dense<0.000000e+00> : vector<32xf32>
    %117 = vector.multi_reduction <add>, %116, %cst_31 [0] : vector<8x32xf32> to vector<32xf32>
    %118 = vector.shape_cast %117 : vector<32xf32> to vector<1x32xf32>
    %119 = arith.mulf %116, %116 : vector<8x32xf32>
    %cst_32 = arith.constant dense<0.000000e+00> : vector<32xf32>
    %120 = vector.multi_reduction <add>, %119, %cst_32 [0] : vector<8x32xf32> to vector<32xf32>
    %121 = vector.shape_cast %120 : vector<32xf32> to vector<1x32xf32>
    %cst_33 = arith.constant 1.250000e-01 : f32
    %122 = vector.broadcast %cst_33 : f32 to vector<1x32xf32>
    %123 = arith.mulf %118, %122 : vector<1x32xf32>
    %cst_34 = arith.constant 1.250000e-01 : f32
    %124 = vector.broadcast %cst_34 : f32 to vector<1x32xf32>
    %125 = arith.mulf %121, %124 : vector<1x32xf32>
    %126 = arith.mulf %123, %123 : vector<1x32xf32>
    %127 = arith.subf %125, %126 : vector<1x32xf32>
    %cst_35 = arith.constant 0.000000e+00 : f32
    %128 = vector.broadcast %cst_35 : f32 to vector<1x32xf32>
    %129 = arith.maximumf %127, %128 : vector<1x32xf32>
    %130 = vector.broadcast %123 : vector<1x32xf32> to vector<8x32xf32>
    %131 = arith.subf %116, %130 : vector<8x32xf32>
    %cst_36 = arith.constant 9.99999974E-6 : f32
    %132 = vector.broadcast %cst_36 : f32 to vector<1x32xf32>
    %133 = arith.addf %129, %132 : vector<1x32xf32>
    %134 = math.rsqrt %133 : vector<1x32xf32>
    %135 = vector.broadcast %134 : vector<1x32xf32> to vector<8x32xf32>
    %136 = arith.mulf %131, %135 : vector<8x32xf32>
    %cst_37 = arith.constant 0.000000e+00 : f32
    %137 = vector.broadcast %cst_37 : f32 to vector<8x32xf32>
    %138 = arith.maximumf %136, %137 : vector<8x32xf32>
    %c64 = arith.constant 64 : index
    %c0_38 = arith.constant 0 : index
    %139 = vector.load %arg1[%c64, %c0_38] : memref<144x128xf32, #tpu.memory_space<vmem>>, vector<32x16xf32>
    %c96 = arith.constant 96 : index
    %c0_39 = arith.constant 0 : index
    %140 = vector.load %arg1[%c96, %c0_39] : memref<144x128xf32, #tpu.memory_space<vmem>>, vector<1x16xf32>
    %cst_40 = arith.constant dense<0.000000e+00> : vector<8x16xf32>
    %141 = tpu.matmul %138, %139, %cst_40 {dimension_numbers = #tpu.dot_dimension_numbers<[1], [0], [0], [1], [0, 0, 1, 1], [], []>} : vector<8x32xf32>, vector<32x16xf32>, vector<8x16xf32> -> vector<8x16xf32>
    %142 = vector.broadcast %140 : vector<1x16xf32> to vector<8x16xf32>
    %143 = arith.addf %141, %142 : vector<8x16xf32>
    %cst_41 = arith.constant dense<0.000000e+00> : vector<16xf32>
    %144 = vector.multi_reduction <add>, %143, %cst_41 [0] : vector<8x16xf32> to vector<16xf32>
    %145 = vector.shape_cast %144 : vector<16xf32> to vector<1x16xf32>
    %146 = arith.mulf %143, %143 : vector<8x16xf32>
    %cst_42 = arith.constant dense<0.000000e+00> : vector<16xf32>
    %147 = vector.multi_reduction <add>, %146, %cst_42 [0] : vector<8x16xf32> to vector<16xf32>
    %148 = vector.shape_cast %147 : vector<16xf32> to vector<1x16xf32>
    %cst_43 = arith.constant 1.250000e-01 : f32
    %149 = vector.broadcast %cst_43 : f32 to vector<1x16xf32>
    %150 = arith.mulf %145, %149 : vector<1x16xf32>
    %cst_44 = arith.constant 1.250000e-01 : f32
    %151 = vector.broadcast %cst_44 : f32 to vector<1x16xf32>
    %152 = arith.mulf %148, %151 : vector<1x16xf32>
    %153 = arith.mulf %150, %150 : vector<1x16xf32>
    %154 = arith.subf %152, %153 : vector<1x16xf32>
    %cst_45 = arith.constant 0.000000e+00 : f32
    %155 = vector.broadcast %cst_45 : f32 to vector<1x16xf32>
    %156 = arith.maximumf %154, %155 : vector<1x16xf32>
    %157 = vector.broadcast %150 : vector<1x16xf32> to vector<8x16xf32>
    %158 = arith.subf %143, %157 : vector<8x16xf32>
    %cst_46 = arith.constant 9.99999974E-6 : f32
    %159 = vector.broadcast %cst_46 : f32 to vector<1x16xf32>
    %160 = arith.addf %156, %159 : vector<1x16xf32>
    %161 = math.rsqrt %160 : vector<1x16xf32>
    %162 = vector.broadcast %161 : vector<1x16xf32> to vector<8x16xf32>
    %163 = arith.mulf %158, %162 : vector<8x16xf32>
    %cst_47 = arith.constant 0.000000e+00 : f32
    %164 = vector.broadcast %cst_47 : f32 to vector<8x16xf32>
    %165 = arith.maximumf %163, %164 : vector<8x16xf32>
    %c104 = arith.constant 104 : index
    %c0_48 = arith.constant 0 : index
    %166 = vector.load %arg1[%c104, %c0_48] : memref<144x128xf32, #tpu.memory_space<vmem>>, vector<16x1xf32>
    %c120 = arith.constant 120 : index
    %c0_49 = arith.constant 0 : index
    %167 = vector.load %arg1[%c120, %c0_49] : memref<144x128xf32, #tpu.memory_space<vmem>>, vector<16x1xf32>
    %c136 = arith.constant 136 : index
    %c0_50 = arith.constant 0 : index
    %168 = vector.load %arg1[%c136, %c0_50] : memref<144x128xf32, #tpu.memory_space<vmem>>, vector<1x1xf32>
    %cst_51 = arith.constant dense<0.000000e+00> : vector<8x1xf32>
    %169 = tpu.matmul %111, %166, %cst_51 {dimension_numbers = #tpu.dot_dimension_numbers<[1], [0], [0], [1], [0, 0, 1, 1], [], []>} : vector<8x16xf32>, vector<16x1xf32>, vector<8x1xf32> -> vector<8x1xf32>
    %cst_52 = arith.constant dense<0.000000e+00> : vector<8x1xf32>
    %170 = tpu.matmul %165, %167, %cst_52 {dimension_numbers = #tpu.dot_dimension_numbers<[1], [0], [0], [1], [0, 0, 1, 1], [], []>} : vector<8x16xf32>, vector<16x1xf32>, vector<8x1xf32> -> vector<8x1xf32>
    %171 = arith.addf %169, %170 : vector<8x1xf32>
    %172 = vector.broadcast %168 : vector<1x1xf32> to vector<8x1xf32>
    %173 = arith.addf %171, %172 : vector<8x1xf32>
    %174 = arith.negf %173 : vector<8x1xf32>
    %175 = math.exp %174 : vector<8x1xf32>
    %cst_53 = arith.constant 1.000000e+00 : f32
    %176 = vector.broadcast %cst_53 : f32 to vector<8x1xf32>
    %177 = arith.addf %176, %175 : vector<8x1xf32>
    %178 = arith.divf %176, %177 : vector<8x1xf32>
    %c0_54 = arith.constant 0 : index
    %c0_55 = arith.constant 0 : index
    %179 = vector.load %arg2[%c0_54, %c0_55] : memref<8x1xf32, #tpu.memory_space<vmem>>, vector<8x1xf32>
    tpu.vector_store %arg2[%c0_54, %c0_55], %178 {strides = array<i32>} : memref<8x1xf32, #tpu.memory_space<vmem>>, vector<8x1xf32>,
    return
  }
}

</mosaic_0001>

<bundles_post_ra>
// kernel: forward.1
= control target key start
LH: loop header
LB: loop body
LE: loop exit
PB: predicated region body
PF: predicated region fallthrough
CT: control target
= control target key end

     0   :  { %7 = vsyncpa [#allocation3], 0  ;;  %s1317_s0 = inlined_call_operand.hbm [shape: f32[8,7], index: 0, kind: input, shape index: {}]   ;;  %s1318_s1 = inlined_call_operand.hbm [shape: f32[144,128], index: 1, kind: input, shape index: {}]   ;;  %s1319_s2 = inlined_call_operand.vmem [shape: f32[8,1], index: 2, kind: output, shape index: {}]  }
   0x1   :  { %8 = vsyncpa [#allocation5], 0  ;;  %s1191_s9 = smov [#allocation2]   ;;  %s1192_s11 = smov [#allocation4]  }
   0x2   :  { %s15_s10 = sshll.u32 %s1191_s9, 4  ;;  %s24_s12 = sshll.u32 %s1192_s11, 4  ;;  %s16_s10 = int_to_ptr.vmem [resolvable:$true] %s15_s10  ;;  %s1220_s12 = int_to_ptr.vmem [resolvable:$true] %s24_s12 }
   0x3   :  { %s1143_s15 = scalar_lea.hbm %s1317_s0, 128 }
   0x4   :  { %p1144_p0 = scmp.ne.s32.totalorder %s1317_s0, %s1143_s15  ;;  %p1147_p1 = scmp.lt.u32.totalorder %s1143_s15, %s1317_s0 }
   0x6   :  { %p1149_p2 = pnand %p1147_p1, %p1144_p0 }
   0x8   :  { %1152 = shalt.err (!%p1149_p2)
}
   0x9   :  { %s1153_s20 = scalar_lea.vmem %s16_s10, 128  ;;  %p1158_p4 = scmp.lt.s32.totalorder %s16_s10, %s16_s10 }
   0xa   :  { %p1154_p3 = scmp.ne.s32.totalorder %s16_s10, %s1153_s20  ;;  %p1159_p5 = scmp.lt.s32.totalorder %s1153_s20, %s1153_s20 }
   0xc   :  { %p1160_p6 = por %p1159_p5, %p1158_p4 }
   0xe   :  { %p1161_p7 = pnand %p1160_p6, %p1154_p3 }
  0x10   :  { %1164 = shalt.err (!%p1161_p7)
}
  0x11   :  { %18 = dma.hbm_to_vmem [thread:$0]  %s1317_s0, 128, %s16_s10, [#allocation3]  }
  0x12   :  { %s1165_s25 = scalar_lea.hbm %s1318_s1, 2304 }
  0x13   :  { %p1166_p8 = scmp.ne.s32.totalorder %s1318_s1, %s1165_s25  ;;  %p1169_p9 = scmp.lt.u32.totalorder %s1165_s25, %s1318_s1 }
  0x15   :  { %p1171_p10 = pnand %p1169_p9, %p1166_p8 }
  0x17   :  { %1174 = shalt.err (!%p1171_p10)
}
  0x18   :  { %s1175_s30 = scalar_lea.vmem %s1220_s12, 2304  ;;  %p1180_p12 = scmp.lt.s32.totalorder %s1220_s12, %s1220_s12 }
  0x19   :  { %p1176_p11 = scmp.ne.s32.totalorder %s1220_s12, %s1175_s30  ;;  %p1181_p13 = scmp.lt.s32.totalorder %s1175_s30, %s1175_s30 }
  0x1b   :  { %p1182_p0 = por %p1181_p13, %p1180_p12 }
  0x1d   :  { %p1183_p1 = pnand %p1182_p0, %p1176_p11 }
  0x1f   :  { %1186 = shalt.err (!%p1183_p1)
}
  0x20   :  { %s1193_s0 = smov 128   ;;  %s1194_s3 = smov 8  }
  0x21   :  { %30 = dma.hbm_to_vmem [thread:$0]  %s1318_s1, 2304, %s1220_s12, [#allocation5], %s1193_s0, %s1193_s0, %s1194_s3  }
  0x22   :  { %1187 = dma.done.wait [#allocation3], 128  }
  0x23   :  { %1188 = vsyncadd [#allocation3], 4294967168 }
  0x24   :  { %1189 = dma.done.wait [#allocation5], 2304  }
  0x25   :  { %1190 = vsyncadd [#allocation5], 4294964992  ;;  %v1195_v0 = vmov 2   ;;  %v1196_v1 = vmov 0   ;;  %v1197_v2 = vmov 0.0   ;;  %v37_v3 = vld [vmem:[#allocation2] sm:$0xff]  ;;  %v39_v13 = vlaneseq }
  0x26   :  { %1125 = vset.pattern.permute.xlu1 %v1195_v0  ;;  %1123 = vset.pattern.permute.xlu0 %v1196_v1  ;;  %v1107_v4 = vtrunc.f32 %v37_v3  ;;  %v1198_v6 = vmov 3   ;;  %v1199_v7 = vmov 1   ;;  %v1200_v9 = vmov 4   ;;  %v90_v12 = vld [vmem:[#allocation4] sm:$0xff]  ;;  %v165_v43 = vld [vmem:[#allocation4 + $0x8] sm:$0xff]  ;;  %v166_v44 = vld [vmem:[#allocation4 + $0x10] sm:$0xff] }
  0x27   :  { %1025 = vmatprep.subr.mxu0 %v1197_v2  ;;  %v1201_v10 = vmov 5   ;;  %v1202_v11 = vmov 6   ;;  %vm1203_vm0 = vmmov 0   ;;  %v40_v14 = vand.u32 127, %v39_v13 }
  0x28   :  { %v1108_v5 = vcvt.f32.s32 %v1107_v4  ;;  %1026 = vmatpush3.msra.mxu0 %v90_v12  ;;  %1027 = vmatprep.mubr.msk.f32.mxu0 %vm1203_vm0, %v1197_v2  ;;  %vm91_vm8 = vcmask 64512   ;;  %v1204_v39 = vmov 0.0|0.0   ;;  %vm280_vm9 = vcmask 130048   ;;  %v593_v12 = vld [vmem:[#allocation4 + $0x30] sm:$0xff] }
  0x29   :  { %1086 = vmatprep.subr.bf16.mxu0 %v1204_v39  ;;  %vm672_vm10 = vcmask 261120   ;;  %vm967_vm11 = vcmask 7168  }
  0x2a   :  { %55 = vperm.xlu1 %1125, %v1108_v5   ;;  %42 = vperm.xlu0 %1123, %v1108_v5   ;;  %v68_v8 = vadd.s32 4, %v1108_v5 }
  0x2e   :  { %1126 = vset.pattern.permute.xlu1 %v1198_v6  ;;  %1124 = vset.pattern.permute.xlu0 %v1199_v7 }
  0x2f   :  { %62 = vperm.xlu1 %1126, %v1108_v5   ;;  %48 = vperm.xlu0 %1124, %v1108_v5  }
  0x33   :  { %1127 = vset.pattern.permute.xlu1 %v1200_v9  ;;  %1128 = vset.pattern.permute.xlu0 %v1201_v10  ;;  %v592_v10 = vld [vmem:[#allocation4 + $0x28] sm:$0xff] }
  0x34   :  { %70 = vperm.xlu1 %1127, %v68_v8   ;;  %77 = vperm.xlu0 %1128, %v68_v8  }
  0x38   :  { %1129 = vset.pattern.permute.xlu1 %v1202_v11 }
  0x39   :  { %84 = vperm.xlu1 %1129, %v68_v8  }
  0xa9   :  { %v56_v15 = vpop.permute.xlu1 %55  ;;  %v43_v16 = vpop.permute.xlu0 %42 }
  0xaa   :  { %vm44_vm1 = vcmp.eq.s32.totalorder %v43_v16, %v40_v14  ;;  %vm57_vm2 = vcmp.eq.s32.totalorder %v56_v15, %v40_v14 }
  0xab   :  { %v975_v19 = vsel %vm44_vm1, 1.0, %v1197_v2  ;;  %v977_v22 = vsel %vm57_vm2, 1.0, %v1197_v2 }
  0xae   :  { %v63_v17 = vpop.permute.xlu1 %62  ;;  %v49_v18 = vpop.permute.xlu0 %48 }
  0xaf   :  { %vm50_vm3 = vcmp.eq.s32.totalorder %v49_v18, %v40_v14  ;;  %vm64_vm4 = vcmp.eq.s32.totalorder %v63_v17, %v40_v14  ;;  %v698_v17 = vld [vmem:[#allocation4 + $0x40] sm:$0xff]  ;;  %v699_v18 = vld [vmem:[#allocation4 + $0x48] sm:$0xff] }
  0xb0   :  { %v976_v20 = vsel %vm50_vm3, 1.0, %v1197_v2  ;;  %v978_v26 = vsel %vm64_vm4, 1.0, %v1197_v2 }
  0xb1   :  { %v53_v21 = vadd.f32 %v976_v20, %v975_v19  ;;  %v989_v20 = vld [vmem:[#allocation4 + $0x38] ss:$0 sm:$0xff] }
  0xb3   :  { %v60_v23 = vadd.f32 %v977_v22, %v53_v21  ;;  %v71_v24 = vpop.permute.xlu1 %70  ;;  %v78_v25 = vpop.permute.xlu0 %77  ;;  %v379_v22 = vld [vmem:[#allocation4 + $0x18] sm:$0xff] }
  0xb4   :  { %vm72_vm5 = vcmp.eq.s32.totalorder %v71_v24, %v40_v14  ;;  %vm79_vm6 = vcmp.eq.s32.totalorder %v78_v25, %v40_v14 }
  0xb5   :  { %v67_v27 = vadd.f32 %v978_v26, %v60_v23  ;;  %v979_v28 = vsel %vm72_vm5, 1.0, %v1197_v2  ;;  %v980_v29 = vsel %vm79_vm6, 1.0, %v1197_v2  ;;  %v1096_v23 = vpack.c.bf16 %v699_v18, %v698_v17  ;;  %v700_v26 = vld [vmem:[#allocation4 + $0x50] sm:$0xff] }
  0xb7   :  { %v75_v30 = vadd.f32 %v979_v28, %v67_v27  ;;  %v701_v27 = vld [vmem:[#allocation4 + $0x58] sm:$0xff] }
  0xb8   :  { %v85_v31 = vpop.permute.xlu1 %84 }
  0xb9   :  { %v82_v32 = vadd.f32 %v980_v29, %v75_v30  ;;  %vm86_vm7 = vcmp.eq.s32.totalorder %v85_v31, %v40_v14  ;;  %v1093_v14 = vpack.c.bf16 %v593_v12, %v592_v10  ;;  %v1099_v31 = vpack.c.bf16 %v701_v27, %v700_v26  ;;  %v991_v12 = vld [vmem:[#allocation4 + $0x60] ss:$0 sm:$0xff] }
  0xba   :  { %v981_v33 = vsel %vm86_vm7, 1.0, %v1197_v2 }
  0xbb   :  { %v89_v34 = vadd.f32 %v981_v33, %v82_v32 }
  0xbd   :  { %1028 = vmatmul.mubr.msk.f32.vlgmr.msra.gmra.mrb[0].mxu0 %vm91_vm8, %v89_v34 }
  0xbe   :  { %1039 = vmatprep.mubr.msk.f32.mxu0 %vm1203_vm0, %v1197_v2 }
 0x190   :  { %v1265_v35 = vpop.f32.mrb[0].mxu0 }
 0x191   :  { %167 = vxpose.xlu1.b32.start.end [1/1] (short) (narrow) %v1265_v35, 16  ;;  %v1029_v36 = vpop.f32.mrb[1].mxu0  ;;  %1030 = vmatprep.subr.mxu1 %v1265_v35 }
 0x192   :  { %1031 = vmatpush3.msra.mxu1 %v1265_v35 }
 0x193   :  { %1042 = vmatprep.subr.mxu1 %v1265_v35 }
 0x211   :  { %v183_v37 = vpop.trf.xlu1 }
 0x212   :  { %1032 = vmatprep.mubr.msk.f32.mxu1 %vm91_vm8, %v183_v37 }
 0x215   :  { %v184_v38 = vpop.trf.xlu1 }
 0x216   :  { %1033 = vmatmul.mubr.msk.f32.vlgmr.msra.gmra.mrb[0].mxu1 %vm91_vm8, %v184_v38 }
 0x217   :  { %1043 = vmatpush3.msra.mxu1 %v1265_v35 }
 0x218   :  { %1092 = vmatprep.subr.bf16.mxu1 %v1204_v39 }
 0x2e9   :  { %v1034_v40 = vpop.f32.mrb[0].mxu1 }
 0x2ea   :  { %v271_v41 = vpop.f32.mrb[1].mxu1 }
 0x2eb   :  { %v1087_v42 = vpack.c.bf16 %v1034_v40, %v271_v41 }
 0x2ed   :  { %1088 = vmatpush3.bf16.msra.mxu0 %v1087_v42 }
 0x2ee   :  { %1089 = vmatprep.subr.bf16.mxu0 %v1204_v39 }
 0x2f0   :  { %1040 = vmatmul.mubr.msk.f32.vlgmr.msra.gmra.mrb[2].mxu0 %vm280_vm9, %v165_v43 }
 0x2f1   :  { %1051 = vmatprep.mubr.msk.f32.mxu0 %vm1203_vm0, %v1197_v2 }
 0x3c3   :  { %v350_v45 = vpop.f32.mrb[2].mxu0 }
 0x3c4   :  { %v351_v46 = vadd.f32 %v350_v45, %v1265_v35  ;;  %v1041_v47 = vpop.f32.mrb[3].mxu0 }
 0x3c6   :  { %v354_v48 = vadd.f32 %v351_v46, %v166_v44 }
 0x3c8   :  { %v355_v49 = vsel %vm280_vm9, %v354_v48, 0.0  ;;  %v362_v50 = vmul.f32 %v354_v48, %v354_v48 }
 0x3c9   :  { %v356_v51 = vrot.slane %v355_v49, 4 }
 0x3ca   :  { %v363_v52 = vsel %vm280_vm9, %v362_v50, 0.0 }
 0x3cb   :  { %v357_v53 = vadd.f32 %v356_v51, %v355_v49  ;;  %v364_v54 = vrot.slane %v363_v52, 4 }
 0x3cd   :  { %v358_v55 = vrot.slane %v357_v53, 2  ;;  %v365_v56 = vadd.f32 %v364_v54, %v363_v52 }
 0x3cf   :  { %v359_v57 = vadd.f32 %v358_v55, %v357_v53  ;;  %v366_v58 = vrot.slane %v365_v56, 2  ;;  %v807_v55 = vld [vmem:[#allocation4 + $0x78] sm:$0xff] }
 0x3d1   :  { %v367_v59 = vadd.f32 %v366_v58, %v365_v56  ;;  %v360_v60 = vrot.slane %v359_v57, 1  ;;  %v808_v56 = vld [vmem:[#allocation4 + $0x80] sm:$0xff] }
 0x3d3   :  { %v368_v61 = vrot.slane %v367_v59, 1  ;;  %v361_v62 = vadd.f32 %v360_v60, %v359_v57  ;;  %v1102_v57 = vpack.c.bf16 %v808_v56, %v807_v55 }
 0x3d5   :  { %v369_v63 = vadd.f32 %v368_v61, %v367_v59  ;;  %v370_v0 = vmul.f32 0.125, %v361_v62  ;;  %v380_v61 = vld [vmem:[#allocation4 + $0x20] sm:$0xff] }
 0x3d7   :  { %v371_v1 = vmul.f32 0.125, %v369_v63  ;;  %v372_v3 = vmul.f32 %v370_v0, %v370_v0  ;;  %v375_v7 = vsub.f32 %v354_v48, %v370_v0 }
 0x3d9   :  { %v373_v4 = vsub.f32 %v371_v1, %v372_v3 }
 0x3db   :  { %v374_v5 = vmax.f32 %v373_v4, 0.0 }
 0x3dd   :  { %v376_v6 = vadd.f32 1e-05, %v374_v5 }
 0x3df   :  { %1131 = vrsqrt.f32 %v376_v6 }
 0x3e9   :  { %v1132_v8 = vpop.eup %1131 }
 0x3ea   :  { %v1283_v9 = vmul.f32 %v1132_v8, %v375_v7 }
 0x3ec   :  { %381 = vxpose.xlu0.b32.start.end [1/1] (short) (narrow) %v1283_v9, 16 }
 0x415   :  { %1130 = vset.pattern.permute.xlu0 %v1202_v11 }
 0x46c   :  { %v397_v13 = vpop.trf.xlu0 }
 0x46d   :  { %1044 = vmatprep.mubr.msk.f32.mxu1 %vm91_vm8, %v397_v13 }
 0x470   :  { %v398_v15 = vpop.trf.xlu0 }
 0x471   :  { %1045 = vmatmul.mubr.msk.f32.vlgmr.msra.gmra.mrb[2].mxu1 %vm91_vm8, %v398_v15 }
 0x472   :  { %1094 = vmatpush3.bf16.msra.mxu1 %v1093_v14  ;;  %1058 = vmatprep.mubr.msk.f32.mxu1 %vm1203_vm0, %v1197_v2 }
 0x473   :  { %1101 = vmatprep.subr.bf16.mxu1 %v1204_v39 }
 0x475   :  { %1059 = vmatmul.mubr.msk.f32.vlgmr.msra.gmra.mrb[4].mxu1 %vm280_vm9, %v1265_v35 }
 0x476   :  { %1076 = vmatprep.mubr.msk.f32.mxu1 %vm1203_vm0, %v1197_v2  ;;  %1103 = vmatpush3.bf16.msra.mxu1 %v1102_v57 }
 0x477   :  { %1104 = vmatprep.subr.bf16.mxu1 %v1204_v39 }
 0x544   :  { %v1046_v11 = vpop.f32.mrb[2].mxu1 }
 0x545   :  { %v485_v16 = vpop.f32.mrb[3].mxu1 }
 0x546   :  { %v1090_v19 = vpack.c.bf16 %v1046_v11, %v485_v16 }
 0x548   :  { %1091 = vmatpush3.bf16.msra.mxu0 %v1090_v19  ;;  %v668_v21 = vpop.f32.mrb[4].mxu1 }
 0x549   :  { %v669_v24 = vadd.f32 %v989_v20, %v668_v21  ;;  %v1060_v25 = vpop.f32.mrb[5].mxu1  ;;  %1095 = vmatprep.subr.bf16.mxu0 %v1204_v39 }
 0x54b   :  { %v673_v28 = vsel %vm672_vm10, %v669_v24, 0.0  ;;  %v680_v29 = vmul.f32 %v669_v24, %v669_v24  ;;  %1052 = vmatmul.mubr.msk.f32.vlgmr.msra.gmra.mrb[4].mxu0 %vm280_vm9, %v379_v22 }
 0x54c   :  { %v674_v30 = vrot.slane %v673_v28, 4  ;;  %1097 = vmatpush3.bf16.msra.mxu0 %v1096_v23  ;;  %1069 = vmatprep.mubr.msk.f32.mxu0 %vm1203_vm0, %v1197_v2 }
 0x54d   :  { %v681_v32 = vsel %vm672_vm10, %v680_v29, 0.0  ;;  %1098 = vmatprep.subr.bf16.mxu0 %v1204_v39 }
 0x54e   :  { %v675_v33 = vadd.f32 %v674_v30, %v673_v28  ;;  %v682_v34 = vrot.slane %v681_v32, 4 }
 0x550   :  { %v676_v35 = vrot.slane %v675_v33, 2  ;;  %v683_v36 = vadd.f32 %v682_v34, %v681_v32  ;;  %1100 = vmatpush3.bf16.msra.mxu0 %v1099_v31 }
 0x552   :  { %v677_v37 = vadd.f32 %v676_v35, %v675_v33  ;;  %v684_v38 = vrot.slane %v683_v36, 2 }
 0x554   :  { %v678_v40 = vrot.slane %v677_v37, 1  ;;  %v685_v41 = vadd.f32 %v684_v38, %v683_v36 }
 0x556   :  { %v679_v42 = vadd.f32 %v678_v40, %v677_v37  ;;  %v686_v43 = vrot.slane %v685_v41, 1 }
 0x558   :  { %v687_v44 = vadd.f32 %v686_v43, %v685_v41  ;;  %v688_v45 = vmul.f32 0.125, %v679_v42 }
 0x55a   :  { %v689_v46 = vmul.f32 0.125, %v687_v44  ;;  %v690_v47 = vmul.f32 %v688_v45, %v688_v45  ;;  %v693_v51 = vsub.f32 %v669_v24, %v688_v45 }
 0x55c   :  { %v691_v48 = vsub.f32 %v689_v46, %v690_v47  ;;  %v805_v47 = vld [vmem:[#allocation4 + $0x68] sm:$0xff] }
 0x55e   :  { %v692_v49 = vmax.f32 %v691_v48, 0.0  ;;  %v806_v48 = vld [vmem:[#allocation4 + $0x70] sm:$0xff] }
 0x560   :  { %v694_v50 = vadd.f32 1e-05, %v692_v49 }
 0x562   :  { %1133 = vrsqrt.f32 %v694_v50 }
 0x56c   :  { %v1134_v52 = vpop.eup %1133 }
 0x56d   :  { %v696_v53 = vmul.f32 %v1134_v52, %v693_v51  ;;  %v1105_v51 = vpack.c.bf16 %v806_v48, %v805_v47 }
 0x56f   :  { %v697_v54 = vmax.f32 %v696_v53, 0.0 }
 0x571   :  { %1070 = vmatmul.mubr.msk.f32.vlgmr.msra.gmra.mrb[6].mxu0 %vm672_vm10, %v697_v54 }
 0x61e   :  { %v563_v58 = vpop.f32.mrb[4].mxu0 }
 0x61f   :  { %v1053_v59 = vpop.f32.mrb[5].mxu0  ;;  %v564_v60 = vadd.f32 %v563_v58, %v1283_v9  ;;  %v995_v58 = vld [vmem:[#allocation4 + $0x88] ss:$0 sm:$0xff] }
 0x621   :  { %v567_v62 = vadd.f32 %v564_v60, %v380_v61 }
 0x623   :  { %v568_v63 = vsel %vm280_vm9, %v567_v62, 0.0  ;;  %v575_v0 = vmul.f32 %v567_v62, %v567_v62 }
 0x624   :  { %v569_v1 = vrot.slane %v568_v63, 4 }
 0x625   :  { %v576_v3 = vsel %vm280_vm9, %v575_v0, 0.0 }
 0x626   :  { %v570_v4 = vadd.f32 %v569_v1, %v568_v63  ;;  %v577_v5 = vrot.slane %v576_v3, 4 }
 0x628   :  { %v571_v6 = vrot.slane %v570_v4, 2  ;;  %v578_v7 = vadd.f32 %v577_v5, %v576_v3 }
 0x62a   :  { %v572_v8 = vadd.f32 %v571_v6, %v570_v4  ;;  %v579_v10 = vrot.slane %v578_v7, 2 }
 0x62c   :  { %v573_v15 = vrot.slane %v572_v8, 1  ;;  %v580_v9 = vadd.f32 %v579_v10, %v578_v7 }
 0x62e   :  { %v574_v19 = vadd.f32 %v573_v15, %v572_v8  ;;  %v581_v20 = vrot.slane %v580_v9, 1 }
 0x630   :  { %v582_v25 = vadd.f32 %v581_v20, %v580_v9  ;;  %v583_v26 = vmul.f32 0.125, %v574_v19 }
 0x632   :  { %v584_v31 = vmul.f32 0.125, %v582_v25  ;;  %v585_v32 = vmul.f32 %v583_v26, %v583_v26  ;;  %v588_v54 = vsub.f32 %v567_v62, %v583_v26 }
 0x634   :  { %v586_v37 = vsub.f32 %v584_v31, %v585_v32 }
 0x636   :  { %v587_v42 = vmax.f32 %v586_v37, 0.0 }
 0x638   :  { %v589_v45 = vadd.f32 1e-05, %v587_v42 }
 0x644   :  { %v776_v39 = vpop.f32.mrb[6].mxu0 }
 0x645   :  { %v777_v13 = vadd.f32 %v991_v12, %v776_v39  ;;  %v1071_v14 = vpop.f32.mrb[7].mxu0 }
 0x647   :  { %v780_v11 = vsel %vm280_vm9, %v777_v13, 0.0  ;;  %v787_v16 = vmul.f32 %v777_v13, %v777_v13 }
 0x648   :  { %v781_v17 = vrot.slane %v780_v11, 4 }
 0x649   :  { %v788_v18 = vsel %vm280_vm9, %v787_v16, 0.0 }
 0x64a   :  { %v782_v21 = vadd.f32 %v781_v17, %v780_v11  ;;  %v789_v22 = vrot.slane %v788_v18, 4 }
 0x64c   :  { %v783_v23 = vrot.slane %v782_v21, 2  ;;  %v790_v24 = vadd.f32 %v789_v22, %v788_v18 }
 0x64e   :  { %v784_v27 = vadd.f32 %v783_v23, %v782_v21  ;;  %v791_v28 = vrot.slane %v790_v24, 2 }
 0x650   :  { %v785_v29 = vrot.slane %v784_v27, 1  ;;  %v792_v30 = vadd.f32 %v791_v28, %v790_v24 }
 0x652   :  { %v786_v33 = vadd.f32 %v785_v29, %v784_v27  ;;  %v793_v34 = vrot.slane %v792_v30, 1 }
 0x654   :  { %v794_v35 = vadd.f32 %v793_v34, %v792_v30  ;;  %v795_v36 = vmul.f32 0.125, %v786_v33 }
 0x656   :  { %v796_v38 = vmul.f32 0.125, %v794_v35  ;;  %v797_v40 = vmul.f32 %v795_v36, %v795_v36  ;;  %v800_v46 = vsub.f32 %v777_v13, %v795_v36 }
 0x658   :  { %v798_v41 = vsub.f32 %v796_v38, %v797_v40 }
 0x65a   :  { %v799_v43 = vmax.f32 %v798_v41, 0.0 }
 0x65c   :  { %v801_v44 = vadd.f32 1e-05, %v799_v43 }
 0x65e   :  { %1135 = vrsqrt.f32 %v801_v44 }
 0x65f   :  { %1137 = vrsqrt.f32 %v589_v45 }
 0x668   :  { %v1136_v49 = vpop.eup %1135 }
 0x669   :  { %v803_v50 = vmul.f32 %v1136_v49, %v800_v46  ;;  %v1138_v53 = vpop.eup %1137 }
 0x66a   :  { %v591_v55 = vmul.f32 %v1138_v53, %v588_v54 }
 0x66b   :  { %v804_v52 = vmax.f32 %v803_v50, 0.0 }
 0x66d   :  { %1077 = vmatmul.mubr.msk.f32.vlgmr.msra.gmra.mrb[6].mxu1 %vm280_vm9, %v804_v52 }
 0x66e   :  { %1106 = vmatpush3.bf16.msra.mxu1 %v1105_v51  ;;  %1083 = vmatprep.mubr.msk.f32.mxu1 %vm1203_vm0, %v1197_v2 }
 0x671   :  { %1084 = vmatmul.mubr.msk.f32.vlgmr.msra.gmra.mrb[8].mxu1 %vm280_vm9, %v591_v55 }
 0x740   :  { %v879_v56 = vpop.f32.mrb[6].mxu1 }
 0x741   :  { %v1078_v57 = vpop.f32.mrb[7].mxu1 }
 0x744   :  { %v952_v59 = vpop.f32.mrb[8].mxu1 }
 0x745   :  { %v953_v60 = vadd.f32 %v952_v59, %v879_v56  ;;  %v1085_v61 = vpop.f32.mrb[9].mxu1 }
 0x747   :  { %v960_v63 = vadd.f32 %v995_v58, %v953_v60 }
 0x749   :  { %v996_v0 = vmul.f32 -1.442695, %v960_v63 }
 0x74b   :  { %1139 = vpow2.f32 %v996_v0 }
 0x755   :  { %v1140_v1 = vpop.eup %1139 }
 0x756   :  { %v964_v62 = vadd.f32 1.0, %v1140_v1 }
 0x758   :  { %1141 = vrcp.f32 %v964_v62 }
 0x762   :  { %v1142_v3 = vpop.eup %1141 }
 0x763   :  { %968 = vst.msk [vmem:[%s1319_s2] sm:$0xff] %vm967_vm11, %v1142_v3 }
 0x764   :  { %973 = vsyncpa [#allocation3], 1 }
 0x765   :  { %974 = vsyncpa [#allocation5], 1 }

</bundles_post_ra>
